<compile_context>
chip_gen: v7x
topology: tpu7x:2x2x1
jax: 0.10.0
libtpu: 0.0.40
codegen_flags: <defaults>
</compile_context>

<pallas_src>
import functools

import jax
import jax.numpy as jnp
from jax.experimental import pallas as pl
from jax.experimental.pallas import tpu as pltpu

_LANE = 128
_SUBLANE = 8
# 4 inputs x 2 (double-buffered) + ~10 row-sized f32 temporaries
# (casts, diffs, shifted copies, weights, masks) live at peak.
_BUFS_PER_ROW = 18


def _round_up(x, m):
    return (x + m - 1) // m * m


def _bytes_per_row(ch, w):
    """Approx. VMEM bytes per row of the (rows, ch*W) view, incl. temporaries."""
    l_pad = _round_up(ch * w, _LANE)
    return _BUFS_PER_ROW * l_pad * 4


def _vmem_budget():
    """Generation-aware (limit, working-set budget) in bytes."""
    try:
        info = pltpu.get_tpu_info()
        cap = int(getattr(info, "vmem_capacity_bytes", 0)) or 64 * 1024 * 1024
    except Exception:  # pragma: no cover - conservative fallback (v7x per-TC)
        cap = 64 * 1024 * 1024
    limit = min((cap * 3) // 4, 96 * 1024 * 1024)   # ~48 MiB v7x, ~96 MiB v5e/v6e
    budget = (limit * 3) // 5                        # headroom for scratch/outputs
    return limit, budget


def _choose_layout(nc, h, w, budget):
    """Pick (ch, nchunks, rows, tile_rows) for the flattened (rows, ch*W) view."""
    # Largest divisor ch of H such that even the minimum 8-row tile fits.
    ch = 1
    for cand in range(h, 0, -1):
        if h % cand == 0 and _SUBLANE * _bytes_per_row(cand, w) <= budget:
            ch = cand
            break
    # TODO(synk): if even ch == 1 overflows the budget (enormous W), the W axis
    # would also need chunking; not implemented.
    nchunks = h // ch
    rows = nc * nchunks

    t = budget // _bytes_per_row(ch, w)
    if t >= rows:
        tile = rows
    else:
        tile = max(_SUBLANE, (t // _SUBLANE) * _SUBLANE)
    if rows >= 2 * _SUBLANE:
        # Keep >= 2 grid steps so the "parallel" axis can span v7x's 2 TCs.
        tile = min(tile, _round_up((rows + 1) // 2, _SUBLANE))
    return ch, nchunks, rows, tile


def _fixed_loss_tile_kernel(out_ref, gt_ref, est_ref, gtn_ref, sums_ref, *, w):
    """Per-row partial sums for one (tile, ch*W) lane-dense slab.

    Outputs lanes 0..3 of sums_ref: [l2, asym, h_tv, w_tv] per row; every
    normalization / scale factor is applied once outside the kernel.
    """
    t, l = est_ref.shape
    f32 = jnp.float32

    out = out_ref[...].astype(f32)
    gt = gt_ref[...].astype(f32)
    est = est_ref[...].astype(f32)
    gtn = gtn_ref[...].astype(f32)

    # ---- sum((out - gt)^2) per row -----------------------------------------
    d = out - gt
    l2 = jnp.sum(d * d, axis=1, keepdims=True)

    # ---- sum(|0.3 - (gtn < est)| * (est - gtn)^2) per row --------------------
    # |0.3 - lt| == where(gtn < est, 0.7, 0.3): one select, no cast/abs.
    wgt = jnp.where(gtn < est, f32(0.7), f32(0.3))
    nd = est - gtn
    asym = jnp.sum(wgt * (nd * nd), axis=1, keepdims=True)

    # ---- total-variation partial sums on the flattened chunk ----------------
    # Vertical pairs inside the chunk: flat offset +W, all valid (no mask).
    if l > w:
        hd = est[:, w:] - est[:, : l - w]
        htv = jnp.sum(hd * hd, axis=1, keepdims=True)
    else:
        htv = jnp.zeros((t, 1), f32)
    # Horizontal pairs: flat offset +1, invalid where the pair crosses an
    # image row (column index % W == W-1).
    if w > 1:
        wd = est[:, 1:] - est[:, : l - 1]
        col = jax.lax.broadcasted_iota(jnp.int32, (1, l - 1), 1)
        wvalid = (col % w) != (w - 1)
        wdm = jnp.where(wvalid, wd, f32(0.0))
        wtv = jnp.sum(wdm * wdm, axis=1, keepdims=True)
    else:
        wtv = jnp.zeros((t, 1), f32)

    # ---- pack the four per-row sums into one lane-dense output --------------
    lane = jax.lax.broadcasted_iota(jnp.int32, (t, 128), 1)
    sums_ref[...] = jnp.where(
        lane == 0, l2,
        jnp.where(lane == 1, asym,
                  jnp.where(lane == 2, htv,
                            jnp.where(lane == 3, wtv, f32(0.0)))))


def fixed_loss(out_image, gt_image, est_noise, gt_noise, if_asym):
    """CBDNet fixed_loss; inputs NCHW, if_asym broadcastable over C/H/W."""
    n, c, h, w = est_noise.shape
    nc = n * c

    vmem_limit, budget = _vmem_budget()
    ch, nchunks, rows, tile = _choose_layout(nc, h, w, budget)
    l = ch * w
    num_tiles = pl.cdiv(rows, tile)

    # if_asym is a per-sample (or per-channel) flag in CBDNet: reduce to one
    # scalar per (n, c) image and apply outside the kernel, so the broadcast
    # tensor never hits HBM.
    # TODO(synk): a spatially-varying if_asym would need to be streamed through
    # the kernel as a fifth full-size input.
    asym_nc = jnp.broadcast_to(if_asym, (n, c, 1, 1)).reshape(nc)
    asym_nc = asym_nc.astype(jnp.float32)

    # Metadata-only reshapes (contiguous row-major splits): every input shares
    # the same lane-dense (rows, ch*W) layout.
    out2d = out_image.reshape(rows, l)
    gt2d = gt_image.reshape(rows, l)
    est2d = est_noise.reshape(rows, l)
    gtn2d = gt_noise.reshape(rows, l)

    in_spec = pl.BlockSpec((tile, l), lambda i: (i, 0))
    out_spec = pl.BlockSpec((tile, 128), lambda i: (i, 0))

    sums = pl.pallas_call(
        functools.partial(_fixed_loss_tile_kernel, w=w),
        grid=(num_tiles,),
        in_specs=[in_spec, in_spec, in_spec, in_spec],
        out_specs=out_spec,
        out_shape=jax.ShapeDtypeStruct((rows, 128), jnp.float32),
        compiler_params=pltpu.CompilerParams(
            dimension_semantics=("parallel",),
            vmem_limit_bytes=int(vmem_limit),
        ),
    )(out2d, gt2d, est2d, gtn2d)

    l2_rows = sums[:, 0]
    asym_rows = sums[:, 1]
    htv_rows = sums[:, 2]
    wtv_rows = sums[:, 3]

    # Tiny epilogue: every scale factor applied exactly once.
    total = jnp.float32(n * c * h * w)
    count_h = jnp.float32(c * (h - 1) * w)   # PyTorch _tensor_size: no batch dim
    count_w = jnp.float32(c * h * (w - 1))

    l2_loss = jnp.sum(l2_rows) / total
    asym_per_img = jnp.sum(asym_rows.reshape(nc, nchunks), axis=1)
    asym_loss = jnp.sum(asym_nc * asym_per_img) / total

    h_tv = jnp.sum(htv_rows)
    if nchunks > 1:
        # Vertical pairs straddling two H-chunks (only when H was chunked):
        # a thin strided slice, 2/ch of est_noise, handled in plain JAX.
        est4 = est_noise.reshape(nc, h, w).astype(jnp.float32)
        top = est4[:, ch::ch, :]
        bot = est4[:, ch - 1:h - 1:ch, :]
        h_tv = h_tv + jnp.sum((top - bot) ** 2)
    w_tv = jnp.sum(wtv_rows)
    tvloss = h_tv / count_h + w_tv / count_w

    return l2_loss + 0.5 * asym_loss + 0.05 * tvloss


def _fixed_loss_ref(out_image, gt_image, est_noise, gt_noise, if_asym):
    """Pure-JAX reference mirroring the PyTorch module."""
    l2_loss = jnp.mean((out_image - gt_image) ** 2)
    asym_loss = jnp.mean(
        if_asym
        * jnp.abs(0.3 - (gt_noise < est_noise).astype(jnp.float32))
        * (est_noise - gt_noise) ** 2)
    n, c, h, w = est_noise.shape
    count_h = c * (h - 1) * w
    count_w = c * h * (w - 1)
    h_tv = jnp.sum((est_noise[:, :, 1:, :] - est_noise[:, :, :-1, :]) ** 2)
    w_tv = jnp.sum((est_noise[:, :, :, 1:] - est_noise[:, :, :, :-1]) ** 2)
    tvloss = h_tv / count_h + w_tv / count_w
    return l2_loss + 0.5 * asym_loss + 0.05 * tvloss


if __name__ == "__main__":
    key = jax.random.PRNGKey(0)
    k1, k2, k3, k4, k5 = jax.random.split(key, 5)

    N, C, H, W = 2, 4, 16, 16
    out_image = jax.random.normal(k1, (N, C, H, W), jnp.float32)
    gt_image = jax.random.normal(k2, (N, C, H, W), jnp.float32)
    est_noise = jax.random.uniform(k3, (N, C, H, W), jnp.float32)
    gt_noise = jax.random.uniform(k4, (N, C, H, W), jnp.float32)
    # if_asym: per-sample 0/1 flag broadcast over C, H, W (as used in CBDNet).
    if_asym = jax.random.bernoulli(k5, 0.5, (N, 1, 1, 1)).astype(jnp.float32)

    loss = jax.jit(fixed_loss)(out_image, gt_image, est_noise, gt_noise, if_asym)
    loss = jax.block_until_ready(loss)

    ref = _fixed_loss_ref(out_image, gt_image, est_noise, gt_noise, if_asym)
    assert jnp.allclose(loss, ref, rtol=1e-4, atol=1e-6), (loss, ref)

    print("KERNEL_OK")
</pallas_src>

<mosaic_0001>
module attributes {stable_mosaic.version = 11 : i64} {
  func.func @_fixed_loss_tile_kernel(%arg0: i32, %arg1: memref<8x256xf32, #tpu.memory_space<vmem>>, %arg2: memref<8x256xf32, #tpu.memory_space<vmem>>, %arg3: memref<8x256xf32, #tpu.memory_space<vmem>>, %arg4: memref<8x256xf32, #tpu.memory_space<vmem>>, %arg5: memref<8x128xf32, #tpu.memory_space<vmem>>) attributes {dimension_semantics = [#tpu.dimension_semantics<parallel>], iteration_bounds = array<i64: 1>, scalar_prefetch = 0 : i64, scratch_operands = 0 : i64, tpu.core_type = #tpu.core_type<tc>, window_params = [{transform_indices = @transform_0, window_bounds = array<i64: 8, 256>}, {transform_indices = @transform_1, window_bounds = array<i64: 8, 256>}, {transform_indices = @transform_2, window_bounds = array<i64: 8, 256>}, {transform_indices = @transform_3, window_bounds = array<i64: 8, 256>}, {transform_indices = @transform_4, window_bounds = array<i64: 8, 128>}]} {
    %c0 = arith.constant 0 : index
    %c0_0 = arith.constant 0 : index
    %0 = vector.load %arg1[%c0, %c0_0] : memref<8x256xf32, #tpu.memory_space<vmem>>, vector<8x256xf32>
    %c0_1 = arith.constant 0 : index
    %c0_2 = arith.constant 0 : index
    %1 = vector.load %arg2[%c0_1, %c0_2] : memref<8x256xf32, #tpu.memory_space<vmem>>, vector<8x256xf32>
    %c0_3 = arith.constant 0 : index
    %c0_4 = arith.constant 0 : index
    %2 = vector.load %arg3[%c0_3, %c0_4] : memref<8x256xf32, #tpu.memory_space<vmem>>, vector<8x256xf32>
    %c0_5 = arith.constant 0 : index
    %c0_6 = arith.constant 0 : index
    %3 = vector.load %arg4[%c0_5, %c0_6] : memref<8x256xf32, #tpu.memory_space<vmem>>, vector<8x256xf32>
    %4 = arith.subf %0, %1 : vector<8x256xf32>
    %5 = arith.mulf %4, %4 : vector<8x256xf32>
    %cst = arith.constant dense<0.000000e+00> : vector<8xf32>
    %6 = vector.multi_reduction <add>, %5, %cst [1] : vector<8x256xf32> to vector<8xf32>
    %7 = vector.shape_cast %6 : vector<8xf32> to vector<8x1xf32>
    %8 = arith.cmpf olt, %3, %2 : vector<8x256xf32>
    %cst_7 = arith.constant 0.699999988 : f32
    %cst_8 = arith.constant 3.000000e-01 : f32
    %9 = vector.broadcast %cst_7 : f32 to vector<8x256xf32>
    %10 = vector.broadcast %cst_8 : f32 to vector<8x256xf32>
    %11 = arith.select %8, %9, %10 : vector<8x256xi1>, vector<8x256xf32>
    %12 = arith.subf %2, %3 : vector<8x256xf32>
    %13 = arith.mulf %12, %12 : vector<8x256xf32>
    %14 = arith.mulf %11, %13 : vector<8x256xf32>
    %cst_9 = arith.constant dense<0.000000e+00> : vector<8xf32>
    %15 = vector.multi_reduction <add>, %14, %cst_9 [1] : vector<8x256xf32> to vector<8xf32>
    %16 = vector.shape_cast %15 : vector<8xf32> to vector<8x1xf32>
    %17 = vector.extract_strided_slice %2 {offsets = [0, 16], sizes = [8, 240], strides = [1, 1]} : vector<8x256xf32> to vector<8x240xf32>
    %18 = vector.extract_strided_slice %2 {offsets = [0, 0], sizes = [8, 240], strides = [1, 1]} : vector<8x256xf32> to vector<8x240xf32>
    %19 = arith.subf %17, %18 : vector<8x240xf32>
    %20 = arith.mulf %19, %19 : vector<8x240xf32>
    %cst_10 = arith.constant dense<0.000000e+00> : vector<8xf32>
    %21 = vector.multi_reduction <add>, %20, %cst_10 [1] : vector<8x240xf32> to vector<8xf32>
    %22 = vector.shape_cast %21 : vector<8xf32> to vector<8x1xf32>
    %23 = vector.extract_strided_slice %2 {offsets = [0, 1], sizes = [8, 255], strides = [1, 1]} : vector<8x256xf32> to vector<8x255xf32>
    %24 = vector.extract_strided_slice %2 {offsets = [0, 0], sizes = [8, 255], strides = [1, 1]} : vector<8x256xf32> to vector<8x255xf32>
    %25 = arith.subf %23, %24 : vector<8x255xf32>
    %26 = tpu.iota {dimensions = array<i32: 1>} : vector<1x255xi32>
    %c16_i32 = arith.constant 16 : i32
    %c0_i32 = arith.constant 0 : i32
    %27 = arith.cmpi eq, %c16_i32, %c0_i32 : i32
    %c1_i32 = arith.constant 1 : i32
    %28 = arith.select %27, %c1_i32, %c16_i32 : i32
    %29 = vector.broadcast %28 : i32 to vector<1x255xi32>
    %30 = arith.remsi %26, %29 : vector<1x255xi32>
    %c0_i32_11 = arith.constant 0 : i32
    %31 = vector.broadcast %c0_i32_11 : i32 to vector<1x255xi32>
    %32 = arith.cmpi ne, %30, %31 : vector<1x255xi32>
    %c0_i32_12 = arith.constant 0 : i32
    %33 = vector.broadcast %c0_i32_12 : i32 to vector<1x255xi32>
    %34 = arith.cmpi slt, %30, %33 : vector<1x255xi32>
    %c0_i32_13 = arith.constant 0 : i32
    %35 = arith.cmpi slt, %28, %c0_i32_13 : i32
    %36 = vector.broadcast %35 : i1 to vector<1x255xi1>
    %37 = vector.broadcast %36 : vector<1x255xi1> to vector<1x255xi1>
    %38 = arith.xori %34, %37 : vector<1x255xi1>
    %39 = arith.andi %38, %32 : vector<1x255xi1>
    %40 = vector.broadcast %28 : i32 to vector<1x255xi32>
    %41 = arith.addi %30, %40 : vector<1x255xi32>
    %42 = arith.select %39, %41, %30 : vector<1x255xi1>, vector<1x255xi32>
    %c15_i32 = arith.constant 15 : i32
    %43 = vector.broadcast %c15_i32 : i32 to vector<1x255xi32>
    %44 = arith.cmpi ne, %42, %43 : vector<1x255xi32>
    %cst_14 = arith.constant 0.000000e+00 : f32
    %45 = vector.shape_cast %44 : vector<1x255xi1> to vector<1x255xi1>
    %46 = vector.broadcast %45 : vector<1x255xi1> to vector<8x255xi1>
    %47 = vector.broadcast %cst_14 : f32 to vector<8x255xf32>
    %48 = arith.select %46, %25, %47 : vector<8x255xi1>, vector<8x255xf32>
    %49 = arith.mulf %48, %48 : vector<8x255xf32>
    %cst_15 = arith.constant dense<0.000000e+00> : vector<8xf32>
    %50 = vector.multi_reduction <add>, %49, %cst_15 [1] : vector<8x255xf32> to vector<8xf32>
    %51 = vector.shape_cast %50 : vector<8xf32> to vector<8x1xf32>
    %52 = tpu.iota {dimensions = array<i32: 1>} : vector<8x128xi32>
    %c0_i32_16 = arith.constant 0 : i32
    %53 = vector.broadcast %c0_i32_16 : i32 to vector<8x128xi32>
    %54 = arith.cmpi eq, %52, %53 : vector<8x128xi32>
    %c1_i32_17 = arith.constant 1 : i32
    %55 = vector.broadcast %c1_i32_17 : i32 to vector<8x128xi32>
    %56 = arith.cmpi eq, %52, %55 : vector<8x128xi32>
    %c2_i32 = arith.constant 2 : i32
    %57 = vector.broadcast %c2_i32 : i32 to vector<8x128xi32>
    %58 = arith.cmpi eq, %52, %57 : vector<8x128xi32>
    %c3_i32 = arith.constant 3 : i32
    %59 = vector.broadcast %c3_i32 : i32 to vector<8x128xi32>
    %60 = arith.cmpi eq, %52, %59 : vector<8x128xi32>
    %cst_18 = arith.constant 0.000000e+00 : f32
    %61 = vector.shape_cast %51 : vector<8x1xf32> to vector<8x1xf32>
    %62 = vector.broadcast %61 : vector<8x1xf32> to vector<8x128xf32>
    %63 = vector.broadcast %cst_18 : f32 to vector<8x128xf32>
    %64 = arith.select %60, %62, %63 : vector<8x128xi1>, vector<8x128xf32>
    %65 = vector.shape_cast %22 : vector<8x1xf32> to vector<8x1xf32>
    %66 = vector.broadcast %65 : vector<8x1xf32> to vector<8x128xf32>
    %67 = arith.select %58, %66, %64 : vector<8x128xi1>, vector<8x128xf32>
    %68 = vector.shape_cast %16 : vector<8x1xf32> to vector<8x1xf32>
    %69 = vector.broadcast %68 : vector<8x1xf32> to vector<8x128xf32>
    %70 = arith.select %56, %69, %67 : vector<8x128xi1>, vector<8x128xf32>
    %71 = vector.shape_cast %7 : vector<8x1xf32> to vector<8x1xf32>
    %72 = vector.broadcast %71 : vector<8x1xf32> to vector<8x128xf32>
    %73 = arith.select %54, %72, %70 : vector<8x128xi1>, vector<8x128xf32>
    %c0_19 = arith.constant 0 : index
    %c0_20 = arith.constant 0 : index
    %74 = vector.load %arg5[%c0_19, %c0_20] : memref<8x128xf32, #tpu.memory_space<vmem>>, vector<8x128xf32>
    tpu.vector_store %arg5[%c0_19, %c0_20], %73 {strides = array<i32>} : memref<8x128xf32, #tpu.memory_space<vmem>>, vector<8x128xf32>,
    return
  }
  func.func @transform_0(%arg0: i32) -> (i32, i32) {
    %c0_i32 = arith.constant 0 : i32
    %c0_i32_0 = arith.constant 0 : i32
    return %arg0, %c0_i32 : i32, i32
  }
  func.func @transform_1(%arg0: i32) -> (i32, i32) {
    %c0_i32 = arith.constant 0 : i32
    %c0_i32_0 = arith.constant 0 : i32
    return %arg0, %c0_i32 : i32, i32
  }
  func.func @transform_2(%arg0: i32) -> (i32, i32) {
    %c0_i32 = arith.constant 0 : i32
    %c0_i32_0 = arith.constant 0 : i32
    return %arg0, %c0_i32 : i32, i32
  }
  func.func @transform_3(%arg0: i32) -> (i32, i32) {
    %c0_i32 = arith.constant 0 : i32
    %c0_i32_0 = arith.constant 0 : i32
    return %arg0, %c0_i32 : i32, i32
  }
  func.func @transform_4(%arg0: i32) -> (i32, i32) {
    %c0_i32 = arith.constant 0 : i32
    %c0_i32_0 = arith.constant 0 : i32
    return %arg0, %c0_i32 : i32, i32
  }
}

</mosaic_0001>

<bundles_post_ra>
// kernel: fixed_loss.1
= control target key start
LH: loop header
LB: loop body
LE: loop exit
PB: predicated region body
PF: predicated region fallthrough
CT: control target
= control target key end

     0   :  { %s152_s17 = smov 16   ;;  %s153_s18 = smov 1   ;;  %vm51_vm0 = vcmask 130048   ;;  %vm77_vm1 = vcmask 7168   ;;  %v156_v20 = vmov 0.3   ;;  %v83_v26 = vlaneseq  ;;  %s209_s2 = inlined_call_operand.vmem [shape: f32[8,256], index: 2, kind: input, shape index: {}]   ;;  %s210_s3 = inlined_call_operand.vmem [shape: f32[8,256], index: 3, kind: input, shape index: {}]   ;;  %s211_s0 = inlined_call_operand.vmem [shape: f32[8,256], index: 0, kind: input, shape index: {}]   ;;  %s212_s1 = inlined_call_operand.vmem [shape: f32[8,256], index: 1, kind: input, shape index: {}]   ;;  %s213_s4 = inlined_call_operand.vmem [shape: f32[8,128], index: 4, kind: output, shape index: {}]  }
   0x1   :  { %v21_v0 = vld [vmem:[%s209_s2] sm:$0xff]  ;;  %v22_v1 = vld [vmem:[%s209_s2 + $0x8] sm:$0xff]  ;;  %s154_s21 = smov 127   ;;  %s155_s22 = smov 112   ;;  %vm122_vm5 = vcmask 1039360   ;;  %vm65_vm7 = vcmask 916480  }
   0x2   :  { %47 = vrot.lane.b32.xlu1 %v21_v0, %s152_s17  ;;  %73 = vrot.lane.b32.xlu0 %v21_v0, %s153_s18  ;;  %v23_v14 = vld [vmem:[%s210_s3] sm:$0xff]  ;;  %v24_v15 = vld [vmem:[%s210_s3 + $0x8] sm:$0xff]  ;;  %v84_v27 = vand.u32 127, %v83_v26 }
   0x3   :  { %v36_v16 = vsub.f32 %v21_v0, %v23_v14  ;;  %v37_v17 = vsub.f32 %v22_v1, %v24_v15  ;;  %vm32_vm2 = vcmp.lt.f32.partialorder %v23_v14, %v21_v0  ;;  %vm33_vm3 = vcmp.lt.f32.partialorder %v24_v15, %v22_v1  ;;  %v17_v31 = vld [vmem:[%s211_s0] sm:$0xff]  ;;  %v18_v32 = vld [vmem:[%s211_s0 + $0x8] sm:$0xff] }
   0x4   :  { %v34_v21 = vsel %vm32_vm2, 0.7, %v156_v20  ;;  %v35_v22 = vsel %vm33_vm3, 0.7, %v156_v20  ;;  %v85_v28 = vadd.s32 128, %v84_v27  ;;  %v90_v30 = vand.u32 15, %v84_v27 }
   0x5   :  { %v38_v18 = vmul.f32 %v36_v16, %v36_v16  ;;  %v39_v19 = vmul.f32 %v37_v17, %v37_v17  ;;  %v19_v33 = vld [vmem:[%s212_s1] sm:$0xff]  ;;  %v20_v34 = vld [vmem:[%s212_s1 + $0x8] sm:$0xff]  ;;  %vm137_vm8 = vcmp.eq.s32.totalorder %v84_v27, 3  ;;  %vm136_vm9 = vcmp.eq.s32.totalorder %v84_v27, 2 }
   0x6   :  { %49 = vrot.lane.b32.xlu1 %v22_v1, %s152_s17  ;;  %75 = vrot.lane.b32.xlu0 %v22_v1, %s153_s18  ;;  %v97_v29 = vand.u32 15, %v85_v28  ;;  %vm110_vm6 = vcmp.ne.s32.totalorder %v90_v30, 15  ;;  %v25_v36 = vsub.f32 %v17_v31, %v19_v33  ;;  %v26_v37 = vsub.f32 %v18_v32, %v20_v34 }
   0x7   :  { %v40_v23 = vmul.f32 %v38_v18, %v34_v21  ;;  %v41_v24 = vmul.f32 %v39_v19, %v35_v22  ;;  %vm135_vm10 = vcmp.eq.s32.totalorder %v84_v27, 1  ;;  %vm134_vm11 = vcmp.eq.s32.totalorder %v84_v27, 0 }
   0x8   :  { %vm111_vm4 = vcmp.ne.s32.totalorder %v97_v29, 15  ;;  %v27_v44 = vmul.f32 %v25_v36, %v25_v36  ;;  %v28_v45 = vmul.f32 %v26_v37, %v26_v37 }
   0x9   :  { %v42_v25 = vadd.f32 %v41_v24, %v40_v23 }
   0xa   :  { %v29_v53 = vadd.f32 %v28_v45, %v27_v44 }
  0x74   :  { %v48_v2 = vpop.permute.xlu1 %47  ;;  %v74_v3 = vpop.permute.xlu0 %73 }
  0x75   :  { %v55_v4 = vsub.f32 %v21_v0, %v48_v2  ;;  %v81_v5 = vsub.f32 %v21_v0, %v74_v3 }
  0x77   :  { %v57_v6 = vmul.f32 %v55_v4, %v55_v4  ;;  %118 = vrot.lane.b32.xlu0 %v81_v5, %s154_s21 }
  0x78   :  { %v50_v7 = vpop.permute.xlu1 %49  ;;  %v76_v8 = vpop.permute.xlu0 %75 }
  0x79   :  { %v52_v9 = vsel %vm51_vm0, %v48_v2, %v50_v7  ;;  %v78_v10 = vsel %vm77_vm1, %v74_v3, %v76_v8 }
  0x7a   :  { %v56_v11 = vsub.f32 %v22_v1, %v52_v9  ;;  %v82_v12 = vsub.f32 %v22_v1, %v78_v10 }
  0x7b   :  { %61 = vrot.lane.b32.xlu0 %v57_v6, %s155_s22 }
  0x7c   :  { %120 = vrot.lane.b32.xlu1 %v82_v12, %s154_s21  ;;  %v58_v13 = vmul.f32 %v56_v11, %v56_v11 }
  0x80   :  { %63 = vrot.lane.b32.xlu1 %v58_v13, %s155_s22 }
  0x9a   :  { %43 = vadd.xlane.f32.xlu0 %v42_v25 }
  0xe9   :  { %v119_v35 = vpop.permute.xlu0 %118 }
  0xed   :  { %v62_v46 = vpop.permute.xlu0 %61 }
  0xee   :  { %v121_v38 = vpop.permute.xlu1 %120 }
  0xef   :  { %v123_v39 = vsel %vm122_vm5, %v119_v35, %v121_v38  ;;  %v127_v40 = vsel %vm111_vm4, %v121_v38, 0.0 }
  0xf0   :  { %v126_v41 = vsel %vm110_vm6, %v123_v39, 0.0  ;;  %v129_v42 = vmul.f32 %v127_v40, %v127_v40 }
  0xf1   :  { %v128_v43 = vmul.f32 %v126_v41, %v126_v41 }
  0xf2   :  { %v64_v47 = vpop.permute.xlu1 %63  ;;  %v130_v48 = vsel %vm122_vm5, %v129_v42, 0.0 }
  0xf3   :  { %v66_v49 = vsel %vm65_vm7, %v62_v46, %v64_v47  ;;  %v69_v50 = vsel %vm65_vm7, %v64_v47, 0.0  ;;  %v131_v51 = vadd.f32 %v130_v48, %v128_v43 }
  0xf4   :  { %v70_v52 = vadd.f32 %v69_v50, %v66_v49 }
  0xf5   :  { %132 = vadd.xlane.f32.xlu0 %v131_v51 }
  0xf6   :  { %71 = vadd.xlane.f32.xlu1 %v70_v52 }
  0xf9   :  { %30 = vadd.xlane.f32.xlu0 %v29_v53 }
 0x127   :  { %v44_v54 = vpop.xlane.xlu0 %43 }
 0x182   :  { %v133_v55 = vpop.xlane.xlu0 %132 }
 0x183   :  { %v138_v56 = vsel %vm137_vm8, %v133_v55, 0.0  ;;  %v72_v57 = vpop.xlane.xlu1 %71 }
 0x184   :  { %v139_v58 = vsel %vm136_vm9, %v72_v57, %v138_v56 }
 0x185   :  { %v140_v59 = vsel %vm135_vm10, %v44_v54, %v139_v58 }
 0x186   :  { %v31_v60 = vpop.xlane.xlu0 %30 }
 0x187   :  { %v141_v61 = vsel %vm134_vm11, %v31_v60, %v140_v59 }
 0x188   :  { %142 = vst [vmem:[%s213_s4] sm:$0xff] %v141_v61 }

</bundles_post_ra>
